<compile_context>
chip_gen: v7x
topology: tpu7x:2x2x1
jax: 0.10.0
libtpu: 0.0.40
codegen_flags: <defaults>
</compile_context>

<pallas_src>
import jax
import jax.numpy as jnp
from jax.experimental import pallas as pl
from jax.experimental.pallas import tpu as pltpu


def _round_up(x, m):
    return ((x + m - 1) // m) * m


def _lincomb_kernel_f32out(x_ref, w_ref, o_ref):
    # Output block is resident across the K axis (same (i, j) block for all k),
    # so accumulate straight into it (f32 output => no extra scratch / copy).
    k = pl.program_id(2)

    @pl.when(k == 0)
    def _():
        o_ref[...] = jnp.zeros_like(o_ref)

    o_ref[...] += jnp.dot(
        x_ref[...], w_ref[...], preferred_element_type=jnp.float32
    )


def _lincomb_kernel_acc(x_ref, w_ref, o_ref, acc_ref):
    # Lower-precision output: keep an f32 accumulator, cast once at the end.
    k = pl.program_id(2)

    @pl.when(k == 0)
    def _():
        acc_ref[...] = jnp.zeros_like(acc_ref)

    acc_ref[...] += jnp.dot(
        x_ref[...], w_ref[...], preferred_element_type=jnp.float32
    )

    @pl.when(k == pl.num_programs(2) - 1)
    def _():
        o_ref[...] = acc_ref[...].astype(o_ref.dtype)


def linear_combination_forward(transformed_basis, spline_weight, *, compute_dtype=None):
    """y = einsum('bid,ido->bo', transformed_basis, spline_weight) via Pallas.

    compute_dtype: optional dtype (e.g. jnp.bfloat16) for streaming the
    operands through the MXU; accumulation is always f32.
    """
    B, in_features, num_grids = transformed_basis.shape
    i2, d2, out_features = spline_weight.shape
    assert (i2, d2) == (in_features, num_grids)

    out_dtype = transformed_basis.dtype
    if compute_dtype is None:
        compute_dtype = out_dtype

    K = in_features * num_grids
    # Row-major collapse of contiguous trailing dims: pure metadata reshape.
    x2d = transformed_basis.reshape(B, K).astype(compute_dtype)          # (B, K)
    w2d = spline_weight.reshape(K, out_features).astype(compute_dtype)   # (K, O)

    # ---- tile selection --------------------------------------------------
    # Sublane multiple depends on the packed dtype (f32: 8, bf16: 16, int8: 32).
    itemsize = jnp.dtype(compute_dtype).itemsize
    sublane = {4: 8, 2: 16, 1: 32}.get(itemsize, 8)

    # M tile: grow with batch, never exceed the padded batch.
    if B >= 256:
        tm = 256
    elif B >= 128:
        tm = 128
    else:
        tm = _round_up(max(B, 1), sublane)

    # N tile: lane-dense (>=128); grow when out_features allows to cut grid
    # steps and widen stores.
    if out_features >= 512:
        tn = 512
    elif out_features >= 256:
        tn = 256
    else:
        tn = 128

    # K reduction tile: big enough to amortize per-step overhead.
    tk = 512 if K >= 512 else _round_up(max(K, 1), 128)

    M_pad = _round_up(B, tm)
    N_pad = _round_up(out_features, tn)
    K_pad = _round_up(K, tk)

    # Zero-pad so every block is full; zero rows/cols contribute nothing.
    if (M_pad, K_pad) != (B, K):
        x2d = jnp.pad(x2d, ((0, M_pad - B), (0, K_pad - K)))
    if (K_pad, N_pad) != (K, out_features):
        w2d = jnp.pad(w2d, ((0, K_pad - K), (0, N_pad - out_features)))

    mt, nt, kt = M_pad // tm, N_pad // tn, K_pad // tk

    f32_out = jnp.dtype(out_dtype) == jnp.dtype(jnp.float32)
    if f32_out:
        kernel = _lincomb_kernel_f32out
        scratch_shapes = []
        out_store_dtype = jnp.float32
    else:
        kernel = _lincomb_kernel_acc
        scratch_shapes = [pltpu.VMEM((tm, tn), jnp.float32)]
        out_store_dtype = out_dtype

    bytes_in = (M_pad * K_pad + K_pad * N_pad) * itemsize
    bytes_out = M_pad * N_pad * jnp.dtype(out_store_dtype).itemsize

    out = pl.pallas_call(
        kernel,
        out_shape=jax.ShapeDtypeStruct((M_pad, N_pad), out_store_dtype),
        grid_spec=pltpu.PrefetchScalarGridSpec(
            num_scalar_prefetch=0,
            grid=(mt, nt, kt),
            in_specs=[
                pl.BlockSpec((tm, tk), lambda i, j, k: (i, k)),
                pl.BlockSpec((tk, tn), lambda i, j, k: (k, j)),
            ],
            out_specs=pl.BlockSpec((tm, tn), lambda i, j, k: (i, j)),
            scratch_shapes=scratch_shapes,
        ),
        compiler_params=pltpu.CompilerParams(
            # M/N parallel (v7x 2-TC sharding), K reduction arbitrary (last).
            dimension_semantics=("parallel", "parallel", "arbitrary"),
            # Explicit budget: per-step tiles are <= ~2 MiB f32, double-buffered
            # inputs included -> comfortably under 32 MiB on every generation.
            vmem_limit_bytes=32 * 1024 * 1024,
        ),
        cost_estimate=pl.CostEstimate(
            flops=2 * M_pad * N_pad * K_pad,
            transcendentals=0,
            bytes_accessed=bytes_in + bytes_out,
        ),
    )(x2d, w2d)

    # Strip padding and restore caller dtype.
    return out[:B, :out_features].astype(out_dtype)


class LinearCombinationLayer:
    """JAX mirror of the PyTorch module (deterministic synthetic params)."""

    def __init__(self, in_features, out_features, num_grids,
                 spline_weight_init_scale=0.1, key=None):
        if key is None:
            key = jax.random.PRNGKey(0)
        self.spline_weight = (
            jax.random.normal(
                key, (in_features, num_grids, out_features), dtype=jnp.float32
            )
            * spline_weight_init_scale
        )

    def __call__(self, transformed_basis, *, compute_dtype=None):
        return linear_combination_forward(
            transformed_basis, self.spline_weight, compute_dtype=compute_dtype
        )


if __name__ == "__main__":
    # Small shapes consistent with the module: batch=8, in_features=16,
    # num_grids=8, out_features=32  (K = 16*8 = 128).
    B, in_features, num_grids, out_features = 8, 16, 8, 32

    root = jax.random.PRNGKey(0)
    k_x, k_w = jax.random.split(root)

    transformed_basis = jax.random.normal(
        k_x, (B, in_features, num_grids), dtype=jnp.float32
    )
    layer = LinearCombinationLayer(in_features, out_features, num_grids, key=k_w)

    # --- f32 path (accumulates directly into the output block) -------------
    y = layer(transformed_basis)
    y = jax.block_until_ready(y)
    y_ref = jnp.einsum("bid,ido->bo", transformed_basis, layer.spline_weight)
    assert y.shape == (B, out_features)
    assert jnp.allclose(y, y_ref, atol=1e-5, rtol=1e-5)

    # --- bf16 compute path (v6e/v7x recommendation): bf16 operands, f32 acc -
    y_bf16c = layer(transformed_basis, compute_dtype=jnp.bfloat16)
    y_bf16c = jax.block_until_ready(y_bf16c)
    assert y_bf16c.dtype == jnp.float32
    assert jnp.allclose(y_bf16c, y_ref, atol=3e-2, rtol=3e-2)

    # --- bf16 input/output path (exercises the f32-scratch kernel) ----------
    tb_bf16 = transformed_basis.astype(jnp.bfloat16)
    y_bf16 = linear_combination_forward(
        tb_bf16, layer.spline_weight.astype(jnp.bfloat16)
    )
    y_bf16 = jax.block_until_ready(y_bf16)
    assert y_bf16.dtype == jnp.bfloat16
    assert jnp.allclose(y_bf16.astype(jnp.float32), y_ref, atol=5e-2, rtol=5e-2)

    print("KERNEL_OK")
</pallas_src>

<mosaic_0001>
module attributes {stable_mosaic.version = 11 : i64} {
  func.func @_lincomb_kernel_f32out(%arg0: i32, %arg1: i32, %arg2: i32, %arg3: memref<8x128xf32, #tpu.memory_space<vmem>>, %arg4: memref<128x128xf32, #tpu.memory_space<vmem>>, %arg5: memref<8x128xf32, #tpu.memory_space<vmem>>) attributes {dimension_semantics = [#tpu.dimension_semantics<parallel>, #tpu.dimension_semantics<parallel>, #tpu.dimension_semantics<arbitrary>], iteration_bounds = array<i64: 1, 1, 1>, scalar_prefetch = 0 : i64, scratch_operands = 0 : i64, tpu.core_type = #tpu.core_type<tc>, window_params = [{transform_indices = @transform_0, window_bounds = array<i64: 8, 128>}, {transform_indices = @transform_1, window_bounds = array<i64: 128, 128>}, {transform_indices = @transform_2, window_bounds = array<i64: 8, 128>}]} {
    %c0_i32 = arith.constant 0 : i32
    %0 = arith.cmpi eq, %arg2, %c0_i32 : i32
    %1 = arith.extui %0 : i1 to i32
    %c0_i32_0 = arith.constant 0 : i32
    %2 = arith.cmpi ne, %1, %c0_i32_0 : i32
    scf.if %2 {
      %cst_8 = arith.constant 0.000000e+00 : f32
      %9 = vector.broadcast %cst_8 : f32 to vector<8x128xf32>
      %c0_9 = arith.constant 0 : index
      %c0_10 = arith.constant 0 : index
      %10 = vector.load %arg5[%c0_9, %c0_10] : memref<8x128xf32, #tpu.memory_space<vmem>>, vector<8x128xf32>
      tpu.vector_store %arg5[%c0_9, %c0_10], %9 {strides = array<i32>} : memref<8x128xf32, #tpu.memory_space<vmem>>, vector<8x128xf32>,
    } else {
    }
    %c0 = arith.constant 0 : index
    %c0_1 = arith.constant 0 : index
    %3 = vector.load %arg5[%c0, %c0_1] : memref<8x128xf32, #tpu.memory_space<vmem>>, vector<8x128xf32>
    %c0_2 = arith.constant 0 : index
    %c0_3 = arith.constant 0 : index
    %4 = vector.load %arg3[%c0_2, %c0_3] : memref<8x128xf32, #tpu.memory_space<vmem>>, vector<8x128xf32>
    %c0_4 = arith.constant 0 : index
    %c0_5 = arith.constant 0 : index
    %5 = vector.load %arg4[%c0_4, %c0_5] : memref<128x128xf32, #tpu.memory_space<vmem>>, vector<128x128xf32>
    %cst = arith.constant dense<0.000000e+00> : vector<8x128xf32>
    %6 = tpu.matmul %4, %5, %cst {dimension_numbers = #tpu.dot_dimension_numbers<[1], [0], [0], [1], [0, 0, 1, 1], [], []>} : vector<8x128xf32>, vector<128x128xf32>, vector<8x128xf32> -> vector<8x128xf32>
    %7 = arith.addf %3, %6 : vector<8x128xf32>
    %c0_6 = arith.constant 0 : index
    %c0_7 = arith.constant 0 : index
    %8 = vector.load %arg5[%c0_6, %c0_7] : memref<8x128xf32, #tpu.memory_space<vmem>>, vector<8x128xf32>
    tpu.vector_store %arg5[%c0_6, %c0_7], %7 {strides = array<i32>} : memref<8x128xf32, #tpu.memory_space<vmem>>, vector<8x128xf32>,
    return
  }
  func.func @transform_0(%arg0: i32, %arg1: i32, %arg2: i32) -> (i32, i32) {
    %c0_i32 = arith.constant 0 : i32
    return %arg0, %arg2 : i32, i32
  }
  func.func @transform_1(%arg0: i32, %arg1: i32, %arg2: i32) -> (i32, i32) {
    %c0_i32 = arith.constant 0 : i32
    return %arg2, %arg1 : i32, i32
  }
  func.func @transform_2(%arg0: i32, %arg1: i32, %arg2: i32) -> (i32, i32) {
    %c0_i32 = arith.constant 0 : i32
    return %arg0, %arg1 : i32, i32
  }
}

</mosaic_0001>

<bundles_post_ra>
// kernel: tpu_custom_call.1
= control target key start
LH: loop header
LB: loop body
LE: loop exit
PB: predicated region body
PF: predicated region fallthrough
CT: control target
= control target key end

     0   :  { %7 = vsyncpa [#allocation3], 0  ;;  %s371_s0 = inlined_call_operand.hbm [shape: f32[8,128], index: 0, kind: input, shape index: {}]   ;;  %s372_s1 = inlined_call_operand.hbm [shape: f32[128,128], index: 1, kind: input, shape index: {}]   ;;  %s373_s2 = inlined_call_operand.hbm [shape: f32[8,128], index: 2, kind: output, shape index: {}]  }
   0x1   :  { %8 = vsyncpa [#allocation6], 0 }
   0x2   :  { %9 = vsyncpa [#allocation4], 0  ;;  %s305_s9 = smov [#allocation2]   ;;  %s306_s11 = smov [#allocation5]  }
   0x3   :  { %s16_s10 = sshll.u32 %s305_s9, 4  ;;  %s25_s12 = sshll.u32 %s306_s11, 4  ;;  %s17_s10 = int_to_ptr.vmem [resolvable:$true] %s16_s10  ;;  %s328_s12 = int_to_ptr.vmem [resolvable:$true] %s25_s12 }
   0x4   :  { %s233_s15 = scalar_lea.hbm %s371_s0, 128 }
   0x5   :  { %p234_p0 = scmp.ne.s32.totalorder %s371_s0, %s233_s15  ;;  %p237_p1 = scmp.lt.u32.totalorder %s233_s15, %s371_s0 }
   0x7   :  { %p239_p2 = pnand %p237_p1, %p234_p0 }
   0x9   :  { %242 = shalt.err (!%p239_p2)
}
   0xa   :  { %s243_s20 = scalar_lea.vmem %s17_s10, 128  ;;  %p248_p4 = scmp.lt.s32.totalorder %s17_s10, %s17_s10 }
   0xb   :  { %p244_p3 = scmp.ne.s32.totalorder %s17_s10, %s243_s20  ;;  %p249_p5 = scmp.lt.s32.totalorder %s243_s20, %s243_s20 }
   0xd   :  { %p250_p6 = por %p249_p5, %p248_p4 }
   0xf   :  { %p251_p7 = pnand %p250_p6, %p244_p3 }
  0x11   :  { %254 = shalt.err (!%p251_p7)
}
  0x12   :  { %19 = dma.hbm_to_vmem [thread:$0]  %s371_s0, 128, %s17_s10, [#allocation3]  }
  0x13   :  { %s255_s25 = scalar_lea.hbm %s372_s1, 2048 }
  0x14   :  { %p256_p8 = scmp.ne.s32.totalorder %s372_s1, %s255_s25  ;;  %p259_p9 = scmp.lt.u32.totalorder %s255_s25, %s372_s1 }
  0x16   :  { %p261_p10 = pnand %p259_p9, %p256_p8 }
  0x18   :  { %264 = shalt.err (!%p261_p10)
}
  0x19   :  { %s265_s30 = scalar_lea.vmem %s328_s12, 2048  ;;  %p270_p12 = scmp.lt.s32.totalorder %s328_s12, %s328_s12 }
  0x1a   :  { %p266_p11 = scmp.ne.s32.totalorder %s328_s12, %s265_s30  ;;  %p271_p13 = scmp.lt.s32.totalorder %s265_s30, %s265_s30 }
  0x1c   :  { %p272_p0 = por %p271_p13, %p270_p12 }
  0x1e   :  { %p273_p1 = pnand %p272_p0, %p266_p11 }
  0x20   :  { %276 = shalt.err (!%p273_p1)
}
  0x21   :  { %s307_s0 = smov 128   ;;  %s308_s3 = smov 8  }
  0x22   :  { %31 = dma.hbm_to_vmem [thread:$0]  %s372_s1, 2048, %s328_s12, [#allocation6], %s307_s0, %s307_s0, %s308_s3  }
  0x23   :  { %299 = dma.done.wait [#allocation3], 128  }
  0x24   :  { %300 = vsyncadd [#allocation3], 4294967168 }
  0x25   :  { %301 = dma.done.wait [#allocation6], 2048  }
  0x26   :  { %302 = vsyncadd [#allocation6], 4294965248  ;;  %v309_v0 = vmov 0.0|0.0   ;;  %vm310_vm0 = vmmov 0   ;;  %v311_v1 = vmov 0.0   ;;  %v45_v2 = vld [vmem:[#allocation5] sm:$0xff] }
  0x27   :  { %201 = vmatprep.subr.bf16.mxu0 %v309_v0  ;;  %198 = vmatprep.mubr.msk.f32.mxu0 %vm310_vm0, %v311_v1  ;;  %v46_v3 = vld [vmem:[#allocation5 + $0x8] sm:$0xff]  ;;  %v47_v4 = vld [vmem:[#allocation5 + $0x10] sm:$0xff]  ;;  %v48_v6 = vld [vmem:[#allocation5 + $0x18] sm:$0xff]  ;;  %s312_s1 = smov [#allocation7]  }
  0x28   :  { %v202_v5 = vpack.c.bf16 %v46_v3, %v45_v2  ;;  %v205_v7 = vpack.c.bf16 %v48_v6, %v47_v4  ;;  %v49_v8 = vld [vmem:[#allocation5 + $0x20] sm:$0xff]  ;;  %v50_v9 = vld [vmem:[#allocation5 + $0x28] sm:$0xff]  ;;  %v51_v11 = vld [vmem:[#allocation5 + $0x30] sm:$0xff]  ;;  %s139_s6 = sshll.u32 %s312_s1, 4  ;;  %s140_s6 = int_to_ptr.vmem [resolvable:$true] %s139_s6 }
  0x29   :  { %v208_v10 = vpack.c.bf16 %v50_v9, %v49_v8  ;;  %v52_v12 = vld [vmem:[#allocation5 + $0x38] sm:$0xff]  ;;  %v53_v14 = vld [vmem:[#allocation5 + $0x40] sm:$0xff]  ;;  %v54_v15 = vld [vmem:[#allocation5 + $0x48] sm:$0xff]  ;;  %s277_s7 = scalar_lea.vmem %s140_s6, 128  ;;  %p282_p3 = scmp.lt.s32.totalorder %s140_s6, %s140_s6 }
  0x2a   :  { %203 = vmatpush3.bf16.msra.mxu0 %v202_v5  ;;  %v211_v13 = vpack.c.bf16 %v52_v12, %v51_v11  ;;  %v214_v16 = vpack.c.bf16 %v54_v15, %v53_v14  ;;  %v55_v17 = vld [vmem:[#allocation5 + $0x50] sm:$0xff]  ;;  %v56_v18 = vld [vmem:[#allocation5 + $0x58] sm:$0xff]  ;;  %v57_v20 = vld [vmem:[#allocation5 + $0x60] sm:$0xff]  ;;  %p278_p2 = scmp.ne.s32.totalorder %s140_s6, %s277_s7  ;;  %p283_p4 = scmp.lt.s32.totalorder %s277_s7, %s277_s7 }
  0x2b   :  { %204 = vmatprep.subr.bf16.mxu0 %v309_v0  ;;  %v217_v19 = vpack.c.bf16 %v56_v18, %v55_v17  ;;  %v58_v21 = vld [vmem:[#allocation5 + $0x68] sm:$0xff]  ;;  %v59_v23 = vld [vmem:[#allocation5 + $0x70] sm:$0xff]  ;;  %v60_v24 = vld [vmem:[#allocation5 + $0x78] sm:$0xff] }
  0x2c   :  { %v220_v22 = vpack.c.bf16 %v58_v21, %v57_v20  ;;  %v223_v25 = vpack.c.bf16 %v60_v24, %v59_v23  ;;  %v44_v26 = vld [vmem:[#allocation2] sm:$0xff]  ;;  %p284_p5 = por %p283_p4, %p282_p3 }
  0x2e   :  { %206 = vmatpush3.bf16.msra.mxu0 %v205_v7  ;;  %p285_p6 = pnand %p284_p5, %p278_p2 }
  0x2f   :  { %207 = vmatprep.subr.bf16.mxu0 %v309_v0 }
  0x32   :  { %209 = vmatpush3.bf16.msra.mxu0 %v208_v10 }
  0x33   :  { %210 = vmatprep.subr.bf16.mxu0 %v309_v0 }
  0x36   :  { %212 = vmatpush3.bf16.msra.mxu0 %v211_v13 }
  0x37   :  { %213 = vmatprep.subr.bf16.mxu0 %v309_v0 }
  0x3a   :  { %215 = vmatpush3.bf16.msra.mxu0 %v214_v16 }
  0x3b   :  { %216 = vmatprep.subr.bf16.mxu0 %v309_v0 }
  0x3e   :  { %218 = vmatpush3.bf16.msra.mxu0 %v217_v19 }
  0x3f   :  { %219 = vmatprep.subr.bf16.mxu0 %v309_v0 }
  0x42   :  { %221 = vmatpush3.bf16.msra.mxu0 %v220_v22 }
  0x43   :  { %222 = vmatprep.subr.bf16.mxu0 %v309_v0 }
  0x46   :  { %224 = vmatpush3.bf16.msra.mxu0 %v223_v25 }
  0x49   :  { %199 = vmatmul.mubr.f32.vlgmr.msra.gmra.mrb[0].mxu0 %v44_v26 }
 0x11c   :  { %v127_v27 = vpop.f32.mrb[0].mxu0 }
 0x11d   :  { %v200_v28 = vpop.f32.mrb[1].mxu0  ;;  %132 = vst [vmem:[#allocation7] sm:$0xff] %v127_v27 }
 0x11e   :  { %288 = shalt.err (!%p285_p6)
}
 0x11f   :  { %s289_s10 = scalar_lea.hbm %s373_s2, 128 }
 0x120   :  { %p290_p7 = scmp.ne.s32.totalorder %s373_s2, %s289_s10  ;;  %p293_p8 = scmp.lt.u32.totalorder %s289_s10, %s373_s2 }
 0x122   :  { %p295_p9 = pnand %p293_p8, %p290_p7 }
 0x124   :  { %298 = shalt.err (!%p295_p9)
}
 0x125   :  { %142 = dma.vmem_to_hbm [thread:$0]  %s140_s6, 128, %s373_s2, [#allocation4]  }
 0x126   :  { %303 = dma.done.wait [#allocation4], 128  }
 0x127   :  { %304 = vsyncadd [#allocation4], 4294967168 }
 0x128   :  { %146 = vsyncpa [#allocation3], 1 }
 0x129   :  { %147 = vsyncpa [#allocation6], 1 }
 0x12a   :  { %148 = vsyncpa [#allocation4], 1 }

</bundles_post_ra>
